<compile_context>
chip_gen: v5e
topology: v5e:2x2
jax: 0.10.0
libtpu: 0.0.40
codegen_flags: <defaults>
</compile_context>

<pallas_src>
import functools
import math

import jax
import jax.numpy as jnp
from jax.experimental import pallas as pl
from jax.experimental.pallas import tpu as pltpu


_VMEM_LIMIT = 48 * 1024 * 1024  # fits under v7x's 64 MiB, generous on v5e/v6e


def _pick_tile(dim, candidates):
    """Largest tile <= candidates[0] that divides `dim`; full dim for small dims."""
    if dim <= candidates[0]:
        return dim
    for c in candidates:
        if dim % c == 0:
            return c
    # TODO(synk): very large, non-divisible dims fall back to a single full
    # block; a pl.cdiv grid with a masked tail would be better there.
    return dim


# --------------------------------------------------------------------------
# Tiled linear: y = x @ W + b
#   grid (R//tm, Dout//tn, Din//tk), f32 accumulator, init/finalize via pl.when
# --------------------------------------------------------------------------
def _linear_kernel(x_ref, w_ref, b_ref, o_ref, acc_ref):
    @pl.when(pl.program_id(2) == 0)
    def _init():
        acc_ref[...] = jnp.zeros(acc_ref.shape, dtype=acc_ref.dtype)

    # Native-dtype operands on the MXU, f32 accumulation.
    acc_ref[...] += jnp.dot(x_ref[...], w_ref[...],
                            preferred_element_type=jnp.float32)

    @pl.when(pl.program_id(2) == pl.num_programs(2) - 1)
    def _finalize():
        o_ref[...] = (acc_ref[...] + b_ref[...].astype(jnp.float32)
                      ).astype(o_ref.dtype)


def linear(x2d, w, b, *, tm=None, tn=None, tk=None):
    """x2d: (R, Din); w: (Din, Dout); b: (Dout,) -> (R, Dout)."""
    R, Din = x2d.shape
    Dout = w.shape[1]

    tm = tm or _pick_tile(R, (1024, 512, 256))     # big row tiles (pipeline eff.)
    tn = tn or _pick_tile(Dout, (1024, 512, 256))  # lane-dense output columns
    tk = tk or _pick_tile(Din, (512, 256))         # contraction tile

    b2 = b.reshape(1, Dout)
    grid = (R // tm, Dout // tn, Din // tk)
    itemsize = jnp.dtype(x2d.dtype).itemsize
    cost = pl.CostEstimate(
        flops=2 * R * Din * Dout,
        transcendentals=0,
        bytes_accessed=(R * Din + Din * Dout + Dout + R * Dout) * itemsize,
    )

    return pl.pallas_call(
        _linear_kernel,
        out_shape=jax.ShapeDtypeStruct((R, Dout), x2d.dtype),
        grid_spec=pltpu.PrefetchScalarGridSpec(
            num_scalar_prefetch=0,
            grid=grid,
            in_specs=[
                pl.BlockSpec((tm, tk), lambda i, j, k: (i, k)),
                pl.BlockSpec((tk, tn), lambda i, j, k: (k, j)),
                pl.BlockSpec((1, tn), lambda i, j, k: (0, j)),
            ],
            out_specs=pl.BlockSpec((tm, tn), lambda i, j, k: (i, j)),
            scratch_shapes=[pltpu.VMEM((tm, tn), jnp.float32)],
        ),
        compiler_params=pltpu.CompilerParams(
            dimension_semantics=("parallel", "parallel", "arbitrary"),
            vmem_limit_bytes=_VMEM_LIMIT,
        ),
        cost_estimate=cost,
    )(x2d, w, b2)


# --------------------------------------------------------------------------
# Flash-style multi-head attention over the fused QKV activation.
#   qkv: (B, S, 2*H*Dk + H*Dv) laid out as [q | k | v], head-major per block.
#   grid (B, S//tq, S//tkv); output written directly in merged (B, S, H*Dv).
# --------------------------------------------------------------------------
def _flash_attn_kernel(q_view_ref, kv_view_ref, o_ref, m_sc, l_sc, acc_sc, *,
                       num_heads, key_dim, value_dim, scale):
    H, Dk, Dv = num_heads, key_dim, value_dim
    d_qk = H * Dk
    ki = pl.program_id(2)

    @pl.when(ki == 0)
    def _init():
        m_sc[...] = jnp.full(m_sc.shape, -jnp.inf, dtype=m_sc.dtype)
        l_sc[...] = jnp.zeros(l_sc.shape, dtype=l_sc.dtype)
        acc_sc[...] = jnp.zeros(acc_sc.shape, dtype=acc_sc.dtype)

    tq = q_view_ref.shape[0]
    tkv = kv_view_ref.shape[0]

    # Slice q / k / v columns out of the fused block and expose the head axis.
    # Scale is folded into q (tq*H*Dk multiplies instead of H*tq*tkv).
    q = q_view_ref[:, :d_qk]                                   # (tq, H*Dk)
    q = jnp.transpose(q.reshape(tq, H, Dk), (1, 0, 2)) * scale  # (H, tq, Dk)
    k = kv_view_ref[:, d_qk:2 * d_qk]                           # (tkv, H*Dk)
    k = jnp.transpose(k.reshape(tkv, H, Dk), (1, 0, 2))         # (H, tkv, Dk)
    v = kv_view_ref[:, 2 * d_qk:]                               # (tkv, H*Dv)
    v = jnp.transpose(v.reshape(tkv, H, Dv), (1, 0, 2))         # (H, tkv, Dv)

    # scores for this kv tile, all heads at once (MXU, f32 accumulation).
    s = jnp.einsum('hqd,hkd->hqk', q, k,
                   preferred_element_type=jnp.float32)          # (H, tq, tkv)

    # online softmax update
    m_prev = m_sc[...]                                          # (H, tq, 1)
    m_new = jnp.maximum(m_prev, jnp.max(s, axis=-1, keepdims=True))
    alpha = jnp.exp(m_prev - m_new)
    p = jnp.exp(s - m_new)                                      # (H, tq, tkv) f32
    l_sc[...] = alpha * l_sc[...] + jnp.sum(p, axis=-1, keepdims=True)
    acc_sc[...] = alpha * acc_sc[...] + jnp.einsum(
        'hqk,hkd->hqd', p.astype(v.dtype), v,
        preferred_element_type=jnp.float32)                     # (H, tq, Dv)
    m_sc[...] = m_new

    @pl.when(ki == pl.num_programs(2) - 1)
    def _finalize():
        inv_l = pl.reciprocal(l_sc[...], approx=True)           # EUP slot
        out = acc_sc[...] * inv_l                               # (H, tq, Dv)
        # merge heads -> single lane-dense store into the (B, S, H*Dv) layout
        merged = jnp.transpose(out, (1, 0, 2)).reshape(tq, H * Dv)
        o_ref[...] = merged.astype(o_ref.dtype)


def _pick_seq_tile(S, cap=256):
    if S <= cap:
        return S
    for t in (256, 128):
        if S % t == 0:
            return t
    return S


def flash_attention(qkv, *, batch, seq, num_heads, key_dim, value_dim,
                    tq=None, tkv=None):
    """qkv: (B, S, 2*H*Dk + H*Dv) -> merged heads output (B, S, H*Dv)."""
    B, S = batch, seq
    H, Dk, Dv = num_heads, key_dim, value_dim
    d_total = 2 * H * Dk + H * Dv
    d_out = H * Dv
    assert qkv.shape == (B, S, d_total), qkv.shape

    tq = tq or _pick_seq_tile(S)
    tkv = tkv or _pick_seq_tile(S)
    scale = 1.0 / math.sqrt(Dk)

    kernel = functools.partial(_flash_attn_kernel, num_heads=H, key_dim=Dk,
                               value_dim=Dv, scale=scale)
    itemsize = jnp.dtype(qkv.dtype).itemsize
    cost = pl.CostEstimate(
        flops=2 * B * H * S * S * (Dk + Dv),
        transcendentals=B * H * S * S,
        bytes_accessed=(2 * B * S * d_total + B * S * d_out) * itemsize,
    )

    return pl.pallas_call(
        kernel,
        out_shape=jax.ShapeDtypeStruct((B, S, d_out), qkv.dtype),
        grid_spec=pltpu.PrefetchScalarGridSpec(
            num_scalar_prefetch=0,
            grid=(B, S // tq, S // tkv),
            in_specs=[
                # query-tile view of the fused qkv activation
                pl.BlockSpec((pl.Squeezed(), tq, d_total),
                             lambda b, qi, ki: (b, qi, 0)),
                # key/value-tile view of the same fused activation
                pl.BlockSpec((pl.Squeezed(), tkv, d_total),
                             lambda b, qi, ki: (b, ki, 0)),
            ],
            out_specs=pl.BlockSpec((pl.Squeezed(), tq, d_out),
                                   lambda b, qi, ki: (b, qi, 0)),
            scratch_shapes=[
                pltpu.VMEM((H, tq, 1), jnp.float32),   # running max m
                pltpu.VMEM((H, tq, 1), jnp.float32),   # running denom l
                pltpu.VMEM((H, tq, Dv), jnp.float32),  # running accumulator
            ],
        ),
        compiler_params=pltpu.CompilerParams(
            dimension_semantics=("parallel", "parallel", "arbitrary"),
            vmem_limit_bytes=_VMEM_LIMIT,
        ),
        cost_estimate=cost,
    )(qkv, qkv)


# --------------------------------------------------------------------------
# Full MultiHeadAttention forward (no wrapper-side head transposes)
# --------------------------------------------------------------------------
def multi_head_attention(x, params, *, num_heads, key_dim, value_dim, mask=None):
    """x: (B, S, Din) -> (B, S, Dout)."""
    if mask is not None:
        # TODO(synk): masked_fill(mask==0, -1e9) path not implemented.
        raise NotImplementedError("attention mask is not supported")

    B, S, Din = x.shape
    H, Dk, Dv = num_heads, key_dim, value_dim

    # Fused QKV projection: one kernel launch, activation read once.
    w_qkv = jnp.concatenate([params["wq"], params["wk"], params["wv"]], axis=1)
    b_qkv = jnp.concatenate([params["bq"], params["bk"], params["bv"]])

    x2 = x.reshape(B * S, Din)
    qkv = linear(x2, w_qkv, b_qkv)                 # (B*S, 2*H*Dk + H*Dv)
    qkv = qkv.reshape(B, S, -1)                    # free reshape, no transpose

    attn = flash_attention(qkv, batch=B, seq=S, num_heads=H,
                           key_dim=Dk, value_dim=Dv)  # (B, S, H*Dv), merged

    out = linear(attn.reshape(B * S, H * Dv), params["wo"], params["bo"])
    return out.reshape(B, S, -1)


# --------------------------------------------------------------------------
# Pure-JAX reference (mirrors the PyTorch module exactly)
# --------------------------------------------------------------------------
def reference_mha(x, params, *, num_heads, key_dim, value_dim):
    B, S, _ = x.shape
    q = x @ params["wq"] + params["bq"]
    k = x @ params["wk"] + params["bk"]
    v = x @ params["wv"] + params["bv"]
    q = q.reshape(B, S, num_heads, key_dim).transpose(0, 2, 1, 3)
    k = k.reshape(B, S, num_heads, key_dim).transpose(0, 2, 1, 3)
    v = v.reshape(B, S, num_heads, value_dim).transpose(0, 2, 1, 3)
    scores = jnp.einsum("bhqd,bhkd->bhqk", q, k) / math.sqrt(key_dim)
    p = jax.nn.softmax(scores, axis=-1)
    out = jnp.einsum("bhqk,bhkd->bhqd", p, v)
    out = out.transpose(0, 2, 1, 3).reshape(B, S, num_heads * value_dim)
    return out @ params["wo"] + params["bo"]


if __name__ == "__main__":
    # Small shapes consistent with the module.
    batch, seq = 2, 8
    input_emb_dim, output_emb_dim = 32, 32
    num_heads, key_dim, value_dim = 4, 8, 8

    key = jax.random.PRNGKey(0)
    ks = jax.random.split(key, 9)
    s = 0.1
    params = {
        "wq": jax.random.normal(ks[0], (input_emb_dim, num_heads * key_dim), jnp.float32) * s,
        "bq": jax.random.normal(ks[1], (num_heads * key_dim,), jnp.float32) * s,
        "wk": jax.random.normal(ks[2], (input_emb_dim, num_heads * key_dim), jnp.float32) * s,
        "bk": jax.random.normal(ks[3], (num_heads * key_dim,), jnp.float32) * s,
        "wv": jax.random.normal(ks[4], (input_emb_dim, num_heads * value_dim), jnp.float32) * s,
        "bv": jax.random.normal(ks[5], (num_heads * value_dim,), jnp.float32) * s,
        "wo": jax.random.normal(ks[6], (num_heads * value_dim, output_emb_dim), jnp.float32) * s,
        "bo": jax.random.normal(ks[7], (output_emb_dim,), jnp.float32) * s,
    }
    x = jax.random.normal(ks[8], (batch, seq, input_emb_dim), dtype=jnp.float32)

    out = multi_head_attention(x, params, num_heads=num_heads,
                               key_dim=key_dim, value_dim=value_dim)
    out = jax.block_until_ready(out)

    ref = reference_mha(x, params, num_heads=num_heads,
                        key_dim=key_dim, value_dim=value_dim)

    assert out.shape == (batch, seq, output_emb_dim), out.shape
    # Tolerance accounts for the approximate (EUP) reciprocal used in the
    # softmax normalization; errors are well below this bound in practice.
    max_err = float(jnp.max(jnp.abs(out - ref)))
    assert jnp.allclose(out, ref, atol=2e-3, rtol=2e-3), \
        f"mismatch vs reference: max abs err {max_err}"

    print("KERNEL_OK")
</pallas_src>

<mosaic_0001>
module attributes {stable_mosaic.version = 11 : i64} {
  func.func @_linear_kernel(%arg0: i32, %arg1: i32, %arg2: i32, %arg3: memref<16x32xf32, #tpu.memory_space<vmem>>, %arg4: memref<32x96xf32, #tpu.memory_space<vmem>>, %arg5: memref<1x96xf32, #tpu.memory_space<vmem>>, %arg6: memref<16x96xf32, #tpu.memory_space<vmem>>, %arg7: memref<16x96xf32, #tpu.memory_space<vmem>>) attributes {dimension_semantics = [#tpu.dimension_semantics<parallel>, #tpu.dimension_semantics<parallel>, #tpu.dimension_semantics<arbitrary>], iteration_bounds = array<i64: 1, 1, 1>, scalar_prefetch = 0 : i64, scratch_operands = 1 : i64, tpu.core_type = #tpu.core_type<tc>, window_params = [{transform_indices = @transform_0, window_bounds = array<i64: 16, 32>}, {transform_indices = @transform_1, window_bounds = array<i64: 32, 96>}, {transform_indices = @transform_2, window_bounds = array<i64: 1, 96>}, {transform_indices = @transform_3, window_bounds = array<i64: 16, 96>}]} {
    %c0_i32 = arith.constant 0 : i32
    %0 = arith.cmpi eq, %arg2, %c0_i32 : i32
    %1 = arith.extui %0 : i1 to i32
    %c0_i32_0 = arith.constant 0 : i32
    %2 = arith.cmpi ne, %1, %c0_i32_0 : i32
    scf.if %2 {
      %cst_10 = arith.constant 0.000000e+00 : f32
      %12 = vector.broadcast %cst_10 : f32 to vector<16x96xf32>
      %c0_11 = arith.constant 0 : index
      %c0_12 = arith.constant 0 : index
      %13 = vector.load %arg7[%c0_11, %c0_12] : memref<16x96xf32, #tpu.memory_space<vmem>>, vector<16x96xf32>
      tpu.vector_store %arg7[%c0_11, %c0_12], %12 {strides = array<i32>} : memref<16x96xf32, #tpu.memory_space<vmem>>, vector<16x96xf32>,
    } else {
    }
    %c0 = arith.constant 0 : index
    %c0_1 = arith.constant 0 : index
    %3 = vector.load %arg7[%c0, %c0_1] : memref<16x96xf32, #tpu.memory_space<vmem>>, vector<16x96xf32>
    %c0_2 = arith.constant 0 : index
    %c0_3 = arith.constant 0 : index
    %4 = vector.load %arg3[%c0_2, %c0_3] : memref<16x32xf32, #tpu.memory_space<vmem>>, vector<16x32xf32>
    %c0_4 = arith.constant 0 : index
    %c0_5 = arith.constant 0 : index
    %5 = vector.load %arg4[%c0_4, %c0_5] : memref<32x96xf32, #tpu.memory_space<vmem>>, vector<32x96xf32>
    %cst = arith.constant dense<0.000000e+00> : vector<16x96xf32>
    %6 = tpu.matmul %4, %5, %cst {dimension_numbers = #tpu.dot_dimension_numbers<[1], [0], [0], [1], [0, 0, 1, 1], [], []>} : vector<16x32xf32>, vector<32x96xf32>, vector<16x96xf32> -> vector<16x96xf32>
    %7 = arith.addf %3, %6 : vector<16x96xf32>
    %c0_6 = arith.constant 0 : index
    %c0_7 = arith.constant 0 : index
    %8 = vector.load %arg7[%c0_6, %c0_7] : memref<16x96xf32, #tpu.memory_space<vmem>>, vector<16x96xf32>
    tpu.vector_store %arg7[%c0_6, %c0_7], %7 {strides = array<i32>} : memref<16x96xf32, #tpu.memory_space<vmem>>, vector<16x96xf32>,
    %c0_i32_8 = arith.constant 0 : i32
    %9 = arith.cmpi eq, %arg2, %c0_i32_8 : i32
    %10 = arith.extui %9 : i1 to i32
    %c0_i32_9 = arith.constant 0 : i32
    %11 = arith.cmpi ne, %10, %c0_i32_9 : i32
    scf.if %11 {
      %c0_10 = arith.constant 0 : index
      %c0_11 = arith.constant 0 : index
      %12 = vector.load %arg7[%c0_10, %c0_11] : memref<16x96xf32, #tpu.memory_space<vmem>>, vector<16x96xf32>
      %c0_12 = arith.constant 0 : index
      %c0_13 = arith.constant 0 : index
      %13 = vector.load %arg5[%c0_12, %c0_13] : memref<1x96xf32, #tpu.memory_space<vmem>>, vector<1x96xf32>
      %14 = vector.broadcast %13 : vector<1x96xf32> to vector<16x96xf32>
      %15 = arith.addf %12, %14 : vector<16x96xf32>
      %c0_14 = arith.constant 0 : index
      %c0_15 = arith.constant 0 : index
      %16 = vector.load %arg6[%c0_14, %c0_15] : memref<16x96xf32, #tpu.memory_space<vmem>>, vector<16x96xf32>
      tpu.vector_store %arg6[%c0_14, %c0_15], %15 {strides = array<i32>} : memref<16x96xf32, #tpu.memory_space<vmem>>, vector<16x96xf32>,
    } else {
    }
    return
  }
  func.func @transform_0(%arg0: i32, %arg1: i32, %arg2: i32) -> (i32, i32) {
    %c0_i32 = arith.constant 0 : i32
    return %arg0, %arg2 : i32, i32
  }
  func.func @transform_1(%arg0: i32, %arg1: i32, %arg2: i32) -> (i32, i32) {
    %c0_i32 = arith.constant 0 : i32
    return %arg2, %arg1 : i32, i32
  }
  func.func @transform_2(%arg0: i32, %arg1: i32, %arg2: i32) -> (i32, i32) {
    %c0_i32 = arith.constant 0 : i32
    %c0_i32_0 = arith.constant 0 : i32
    return %c0_i32, %arg1 : i32, i32
  }
  func.func @transform_3(%arg0: i32, %arg1: i32, %arg2: i32) -> (i32, i32) {
    %c0_i32 = arith.constant 0 : i32
    return %arg0, %arg1 : i32, i32
  }
}

</mosaic_0001>

<bundles_post_ra>
// kernel: tpu_custom_call.1
= control target key start
LH: loop header
LB: loop body
LE: loop exit
PB: predicated region body
PF: predicated region fallthrough
CT: control target
= control target key end

     0   :  { %8 = vsyncpa [#allocation4], 0  ;;  %s274_s0 = inlined_call_operand.hbm [shape: f32[16,32], index: 0, kind: input, shape index: {}]   ;;  %s275_s1 = inlined_call_operand.hbm [shape: f32[32,96], index: 1, kind: input, shape index: {}]   ;;  %s276_s2 = inlined_call_operand.vmem [shape: f32[1,96], index: 2, kind: input, shape index: {}]   ;;  %s277_s3 = inlined_call_operand.hbm [shape: f32[16,96], index: 3, kind: output, shape index: {}]  }
   0x1   :  { %9 = vsyncpa [#allocation7], 0 }
   0x2   :  { %10 = vsyncpa [#allocation5], 0  ;;  %s15_s14 = sshll.u32 %s274_s0, 4  ;;  %s221_s15 = smov [#allocation3]   ;;  %s16_s14 = int_to_ptr.hbm [resolvable:$true] %s15_s14 }
   0x3   :  { %s17_s16 = sshll.u32 %s221_s15, 4  ;;  %s28_s19 = sshll.u32 %s275_s1, 4  ;;  %s18_s16 = int_to_ptr.vmem [resolvable:$true] %s17_s16  ;;  %s29_s19 = int_to_ptr.hbm [resolvable:$true] %s28_s19 }
   0x4   :  { %s222_s20 = smov 128   ;;  %s223_s21 = smov 8  }
   0x5   :  { %23 = dma.hbm_to_vmem [thread:$0]  %s16_s14, 256, %s18_s16, [#allocation4], %s222_s20, %s222_s20, %s223_s21  }
   0x6   :  { %s224_s22 = smov [#allocation6]  }
   0x7   :  { %s30_s23 = sshll.u32 %s224_s22, 4  ;;  %s31_s23 = int_to_ptr.vmem [resolvable:$true] %s30_s23 }
   0x8   :  { %36 = dma.hbm_to_vmem [thread:$0]  %s29_s19, 512, %s31_s23, [#allocation7], %s222_s20, %s222_s20, %s223_s21  }
   0x9   :  { %215 = dma.done.wait [#allocation4], 256  }
   0xa   :  { %216 = vsyncadd [#allocation4], 4294967040 }
   0xb   :  { %217 = dma.done.wait [#allocation7], 512  }
   0xc   :  { %218 = vsyncadd [#allocation7], 4294966784  ;;  %vm51_vm0 = vcmask 785408   ;;  %v225_v0 = vmov 0.0   ;;  %v61_v1 = vld [vmem:[#allocation6 + $0x18] sm:$0xff]  ;;  %v60_v2 = vld [vmem:[#allocation6 + $0x10] sm:$0xff] }
   0xd   :  { %52 = vst.msk [vmem:[#allocation2] sm:$0xff] %vm51_vm0, %v225_v0  ;;  %81 = vmatpush.msra.mxu0 %v61_v1  ;;  %132 = vmatpush.msra.mxu1 %v61_v1  ;;  %v59_v3 = vld [vmem:[#allocation6 + $0x8] sm:$0xff]  ;;  %v58_v4 = vld [vmem:[#allocation6] sm:$0xff]  ;;  %v56_v5 = vld [vmem:[#allocation3] sm:$0xff]  ;;  %vm62_vm1 = vcmask 261120   ;;  %s226_s24 = smov [#allocation8]  }
   0xe   :  { %53 = vst.msk [vmem:[#allocation2 + $0x8] sm:$0xff] %vm51_vm0, %v225_v0  ;;  %v57_v6 = vld [vmem:[#allocation3 + $0x8] sm:$0xff]  ;;  %v142_v13 = vld [vmem:[%s276_s2] ss:$0 sm:$0xff]  ;;  %s114_s25 = sshll.u32 %s226_s24, 4  ;;  %s116_s28 = sshll.u32 %s277_s3, 4  ;;  %s115_s25 = int_to_ptr.vmem [resolvable:$true] %s114_s25  ;;  %s117_s28 = int_to_ptr.hbm [resolvable:$true] %s116_s28 }
   0xf   :  { %82 = vmatpush.msra.mxu0 %v60_v2  ;;  %133 = vmatpush.msra.mxu1 %v60_v2 }
  0x11   :  { %83 = vmatpush.msra.mxu0 %v59_v3  ;;  %134 = vmatpush.msra.mxu1 %v59_v3 }
  0x13   :  { %84 = vmatpush.msra.mxu0 %v58_v4  ;;  %135 = vmatpush.msra.mxu1 %v58_v4 }
  0x14   :  { %130 = vmatmul.msk.f32.vlgmr.msra.gmra.mxu0 %vm62_vm1, %v56_v5  ;;  %131 = vmatmul.msk.f32.vlgmr.msra.gmra.mxu1 %vm62_vm1, %v57_v6  ;;  %v54_v7 = vld [vmem:[#allocation2] sm:$0xff] }
  0x15   :  { %v55_v8 = vld [vmem:[#allocation2 + $0x8] sm:$0xff] }
  0x91   :  { %v86_v9 = vpop.f32.mrf.mxu0  ;;  %v89_v10 = vpop.f32.mrf.mxu1 }
  0x92   :  { %v92_v11 = vadd.f32 %v86_v9, %v54_v7  ;;  %v93_v12 = vadd.f32 %v89_v10, %v55_v8 }
  0x94   :  { %95 = vst.msk [vmem:[#allocation2] sm:$0xff] %vm51_vm0, %v92_v11 }
  0x95   :  { %96 = vst.msk [vmem:[#allocation2 + $0x8] sm:$0xff] %vm51_vm0, %v93_v12 }
  0x9b   :  { %v100_v14 = vld [vmem:[#allocation2] sm:$0xff] }
  0x9c   :  { %v101_v15 = vld [vmem:[#allocation2 + $0x8] sm:$0xff]  ;;  %v106_v16 = vadd.f32 %v142_v13, %v100_v14 }
  0x9d   :  { %v107_v17 = vadd.f32 %v142_v13, %v101_v15 }
  0x9e   :  { %108 = vst.msk [vmem:[#allocation8] sm:$0xff] %vm51_vm0, %v106_v16 }
  0x9f   :  { %109 = vst.msk [vmem:[#allocation8 + $0x8] sm:$0xff] %vm51_vm0, %v107_v17 }
  0xa0   :  { %122 = dma.vmem_to_hbm [thread:$0]  %s115_s25, 256, %s117_s28, [#allocation5], %s222_s20, %s222_s20, %s223_s21  }
  0xa1   :  { %219 = dma.done.wait [#allocation5], 256  }
  0xa2   :  { %220 = vsyncadd [#allocation5], 4294967040 }
  0xa3   :  { %127 = vsyncpa [#allocation4], 1 }
  0xa4   :  { %128 = vsyncpa [#allocation7], 1 }
  0xa5   :  { %129 = vsyncpa [#allocation5], 1 }

</bundles_post_ra>
